<compile_context>
chip_gen: v6e
topology: v6e:2x2x1
jax: 0.10.0
libtpu: 0.0.40
codegen_flags: <defaults>
</compile_context>

<pallas_src>
import functools

import jax
import jax.numpy as jnp
from jax.experimental import pallas as pl
from jax.experimental.pallas import tpu as pltpu


# ---------------------------------------------------------------------------
# Pallas kernel: one fused matmul, split into softmax head + identity head
# ---------------------------------------------------------------------------

def _qmi_kernel(x_ref, w_ref, b_ref, disc_ref, cont_ref, *, dd):
    x = x_ref[...]                                                  # (tm, 64)

    # Single MXU pass for both heads: (tm, 64) @ (64, Dd+Dc) + bias.
    fused = jnp.dot(x, w_ref[...],
                    preferred_element_type=jnp.float32) + b_ref[...]

    # Discrete head: lanes [0, dd) -> numerically stable softmax.
    logits = fused[:, :dd]
    m = jnp.max(logits, axis=-1, keepdims=True)
    e = jnp.exp(logits - m)
    disc_ref[...] = (e / jnp.sum(e, axis=-1, keepdims=True)).astype(disc_ref.dtype)

    # Continuous head: lanes [dd, dd+dc), no activation.
    cont_ref[...] = fused[:, dd:].astype(cont_ref.dtype)


# ---------------------------------------------------------------------------
# One-time parameter prep (hoisted out of the per-call hot path)
# ---------------------------------------------------------------------------

def prepare_qmi_params(params):
    """torch nn.Linear layout: weight (out, in), bias (out,).
    Returns fused (64, Dd+Dc) weight, (1, Dd+Dc) bias, and Dd."""
    wd = jnp.transpose(params["discrete"]["w"]).astype(jnp.float32)    # (64, Dd)
    wc = jnp.transpose(params["continuous"]["w"]).astype(jnp.float32)  # (64, Dc)
    bd = params["discrete"]["b"].astype(jnp.float32)                   # (Dd,)
    bc = params["continuous"]["b"].astype(jnp.float32)                 # (Dc,)
    w_fused = jnp.concatenate([wd, wc], axis=1)                        # (64, Dd+Dc)
    b_fused = jnp.concatenate([bd, bc])[None, :]                       # (1, Dd+Dc)
    return w_fused, b_fused, wd.shape[1]


def _round_up(x, m):
    return ((x + m - 1) // m) * m


# ---------------------------------------------------------------------------
# Wrapper
# ---------------------------------------------------------------------------

@functools.partial(jax.jit, static_argnames=("discrete_dim", "block_rows"))
def qmi_forward(out, w_fused, b_fused, *, discrete_dim, block_rows=2048):
    """out: (B, 64) f32.  Returns (discrete_code (B, Dd), continuous_code (B, Dc))."""
    B, D = out.shape
    Dt = w_fused.shape[1]
    Dd = discrete_dim
    Dc = Dt - Dd

    # Row-tile selection (mem/overhead bound -> big tiles).  For large B, cap
    # the tile so grid >= 2: the "parallel" batch axis then feeds both v7x
    # TensorCores; for small B use one exact block (no padding anywhere).
    if B <= 1024:
        tm = B
    else:
        tm = min(block_rows, _round_up(pl.cdiv(B, 2), 8))
    grid_m = pl.cdiv(B, tm)

    disc, cont = pl.pallas_call(
        functools.partial(_qmi_kernel, dd=Dd),
        out_shape=(jax.ShapeDtypeStruct((B, Dd), jnp.float32),
                   jax.ShapeDtypeStruct((B, Dc), jnp.float32)),
        grid=(grid_m,),
        in_specs=[pl.BlockSpec((tm, D), lambda i: (i, 0)),    # activations (row-tiled)
                  pl.BlockSpec((D, Dt), lambda i: (0, 0)),    # fused weight (resident)
                  pl.BlockSpec((1, Dt), lambda i: (0, 0))],   # fused bias (resident)
        out_specs=(pl.BlockSpec((tm, Dd), lambda i: (i, 0)),
                   pl.BlockSpec((tm, Dc), lambda i: (i, 0))),
        compiler_params=pltpu.CompilerParams(
            dimension_semantics=("parallel",)),
    )(out, w_fused, b_fused)

    return disc, cont


# ---------------------------------------------------------------------------
# Deterministic parameters (torch nn.Linear layout: weight (out, in), bias (out,))
# ---------------------------------------------------------------------------

def init_params(key, feat=64, discrete_dim=10, continuous_dim=2):
    k_wd, k_bd, k_wc, k_bc = jax.random.split(key, 4)
    bound = 1.0 / jnp.sqrt(feat)
    return {
        "discrete": {
            "w": jax.random.uniform(k_wd, (discrete_dim, feat), jnp.float32,
                                    -bound, bound),
            "b": jax.random.uniform(k_bd, (discrete_dim,), jnp.float32,
                                    -bound, bound),
        },
        "continuous": {
            "w": jax.random.uniform(k_wc, (continuous_dim, feat), jnp.float32,
                                    -bound, bound),
            "b": jax.random.uniform(k_bc, (continuous_dim,), jnp.float32,
                                    -bound, bound),
        },
    }


if __name__ == "__main__":
    key = jax.random.PRNGKey(0)
    k_param, k_x = jax.random.split(key)

    batch, feat = 2, 64
    discrete_dim, continuous_dim = 10, 2

    # `out` is the 64-d feature vector the discriminator hands to QMI.
    out = jax.random.normal(k_x, (batch, feat), jnp.float32)
    params = init_params(k_param, feat, discrete_dim, continuous_dim)

    # Layout prep done once, outside the per-call hot path.
    w_fused, b_fused, dd = prepare_qmi_params(params)

    disc, cont = qmi_forward(out, w_fused, b_fused, discrete_dim=dd)
    disc = jax.block_until_ready(disc)
    cont = jax.block_until_ready(cont)

    # Pure-JAX reference (matches the PyTorch forward).
    ref_logits = out @ params["discrete"]["w"].T + params["discrete"]["b"]
    ref_disc = jax.nn.softmax(ref_logits, axis=-1)
    ref_cont = out @ params["continuous"]["w"].T + params["continuous"]["b"]

    assert disc.shape == (batch, discrete_dim)
    assert cont.shape == (batch, continuous_dim)
    assert bool(jnp.all(jnp.isfinite(disc))) and bool(jnp.all(jnp.isfinite(cont)))
    assert bool(jnp.allclose(jnp.sum(disc, axis=-1), 1.0, atol=1e-5))
    assert bool(jnp.allclose(disc, ref_disc, atol=1e-5, rtol=1e-5))
    assert bool(jnp.allclose(cont, ref_cont, atol=1e-5, rtol=1e-5))

    print("KERNEL_OK")
</pallas_src>

<mosaic_0001>
module attributes {stable_mosaic.version = 11 : i64} {
  func.func @_qmi_kernel(%arg0: i32, %arg1: memref<2x64xf32, #tpu.memory_space<vmem>>, %arg2: memref<64x12xf32, #tpu.memory_space<vmem>>, %arg3: memref<1x12xf32, #tpu.memory_space<vmem>>, %arg4: memref<2x10xf32, #tpu.memory_space<vmem>>, %arg5: memref<2x2xf32, #tpu.memory_space<vmem>>) attributes {dimension_semantics = [#tpu.dimension_semantics<parallel>], iteration_bounds = array<i64: 1>, scalar_prefetch = 0 : i64, scratch_operands = 0 : i64, tpu.core_type = #tpu.core_type<tc>, window_params = [{transform_indices = @transform_0, window_bounds = array<i64: 2, 64>}, {pipeline_mode = #tpu.pipeline_mode<synchronous>, transform_indices = @transform_1, window_bounds = array<i64: 64, 12>}, {pipeline_mode = #tpu.pipeline_mode<synchronous>, transform_indices = @transform_2, window_bounds = array<i64: 1, 12>}, {transform_indices = @transform_3, window_bounds = array<i64: 2, 10>}, {transform_indices = @transform_4, window_bounds = array<i64: 2, 2>}]} {
    %c0 = arith.constant 0 : index
    %c0_0 = arith.constant 0 : index
    %0 = vector.load %arg1[%c0, %c0_0] : memref<2x64xf32, #tpu.memory_space<vmem>>, vector<2x64xf32>
    %c0_1 = arith.constant 0 : index
    %c0_2 = arith.constant 0 : index
    %1 = vector.load %arg2[%c0_1, %c0_2] : memref<64x12xf32, #tpu.memory_space<vmem>>, vector<64x12xf32>
    %cst = arith.constant dense<0.000000e+00> : vector<2x12xf32>
    %2 = tpu.matmul %0, %1, %cst {dimension_numbers = #tpu.dot_dimension_numbers<[1], [0], [0], [1], [0, 0, 1, 1], [], []>} : vector<2x64xf32>, vector<64x12xf32>, vector<2x12xf32> -> vector<2x12xf32>
    %c0_3 = arith.constant 0 : index
    %c0_4 = arith.constant 0 : index
    %3 = vector.load %arg3[%c0_3, %c0_4] : memref<1x12xf32, #tpu.memory_space<vmem>>, vector<1x12xf32>
    %4 = vector.broadcast %3 : vector<1x12xf32> to vector<2x12xf32>
    %5 = arith.addf %2, %4 : vector<2x12xf32>
    %6 = vector.extract_strided_slice %5 {offsets = [0, 0], sizes = [2, 10], strides = [1, 1]} : vector<2x12xf32> to vector<2x10xf32>
    %cst_5 = arith.constant dense<0xFF800000> : vector<2xf32>
    %7 = vector.multi_reduction <maximumf>, %6, %cst_5 [1] : vector<2x10xf32> to vector<2xf32>
    %8 = vector.shape_cast %7 : vector<2xf32> to vector<2x1xf32>
    %9 = vector.broadcast %8 : vector<2x1xf32> to vector<2x10xf32>
    %10 = arith.subf %6, %9 : vector<2x10xf32>
    %11 = math.exp %10 : vector<2x10xf32>
    %cst_6 = arith.constant dense<0.000000e+00> : vector<2xf32>
    %12 = vector.multi_reduction <add>, %11, %cst_6 [1] : vector<2x10xf32> to vector<2xf32>
    %13 = vector.shape_cast %12 : vector<2xf32> to vector<2x1xf32>
    %14 = vector.broadcast %13 : vector<2x1xf32> to vector<2x10xf32>
    %15 = arith.divf %11, %14 : vector<2x10xf32>
    %c0_7 = arith.constant 0 : index
    %c0_8 = arith.constant 0 : index
    %16 = vector.load %arg4[%c0_7, %c0_8] : memref<2x10xf32, #tpu.memory_space<vmem>>, vector<2x10xf32>
    tpu.vector_store %arg4[%c0_7, %c0_8], %15 {strides = array<i32>} : memref<2x10xf32, #tpu.memory_space<vmem>>, vector<2x10xf32>,
    %17 = vector.extract_strided_slice %5 {offsets = [0, 10], sizes = [2, 2], strides = [1, 1]} : vector<2x12xf32> to vector<2x2xf32>
    %c0_9 = arith.constant 0 : index
    %c0_10 = arith.constant 0 : index
    %18 = vector.load %arg5[%c0_9, %c0_10] : memref<2x2xf32, #tpu.memory_space<vmem>>, vector<2x2xf32>
    tpu.vector_store %arg5[%c0_9, %c0_10], %17 {strides = array<i32>} : memref<2x2xf32, #tpu.memory_space<vmem>>, vector<2x2xf32>,
    return
  }
  func.func @transform_0(%arg0: i32) -> (i32, i32) {
    %c0_i32 = arith.constant 0 : i32
    %c0_i32_0 = arith.constant 0 : i32
    return %arg0, %c0_i32 : i32, i32
  }
  func.func @transform_1(%arg0: i32) -> (i32, i32) {
    %c0_i32 = arith.constant 0 : i32
    %c0_i32_0 = arith.constant 0 : i32
    %c0_i32_1 = arith.constant 0 : i32
    return %c0_i32, %c0_i32_0 : i32, i32
  }
  func.func @transform_2(%arg0: i32) -> (i32, i32) {
    %c0_i32 = arith.constant 0 : i32
    %c0_i32_0 = arith.constant 0 : i32
    %c0_i32_1 = arith.constant 0 : i32
    return %c0_i32, %c0_i32_0 : i32, i32
  }
  func.func @transform_3(%arg0: i32) -> (i32, i32) {
    %c0_i32 = arith.constant 0 : i32
    %c0_i32_0 = arith.constant 0 : i32
    return %arg0, %c0_i32 : i32, i32
  }
  func.func @transform_4(%arg0: i32) -> (i32, i32) {
    %c0_i32 = arith.constant 0 : i32
    %c0_i32_0 = arith.constant 0 : i32
    return %arg0, %c0_i32 : i32, i32
  }
}

</mosaic_0001>

<bundles_post_ra>
// kernel: qmi_forward.1
= control target key start
LH: loop header
LB: loop body
LE: loop exit
PB: predicated region body
PF: predicated region fallthrough
CT: control target
= control target key end

     0   :  { %10 = vsyncpa [#allocation3], 0  ;;  %v238_v1 = vmov 0.0   ;;  %vm239_vm0 = vmmov 0   ;;  %s307_s0 = inlined_call_operand.vmem [shape: f32[2,64], index: 0, kind: input, shape index: {}]   ;;  %s308_s1 = inlined_call_operand.vmem [shape: f32[64,12], index: 1, kind: input, shape index: {}]   ;;  %s309_s2 = inlined_call_operand.vmem [shape: f32[1,12], index: 2, kind: input, shape index: {}]   ;;  %s310_s3 = inlined_call_operand.hbm [shape: f32[2,10], index: 3, kind: output, shape index: {0}]   ;;  %s311_s4 = inlined_call_operand.hbm [shape: f32[2,2], index: 4, kind: output, shape index: {1}]  }
   0x1   :  { %v26_v0 = vld [vmem:[%s308_s1 + $0x38] sm:$0xff]  ;;  %166 = vmatprep.subr.mxu0 %v238_v1  ;;  %v25_v2 = vld [vmem:[%s308_s1 + $0x30] sm:$0xff]  ;;  %182 = vmatprep.mubr.msk.f32.mxu0 %vm239_vm0, %v238_v1  ;;  %v24_v3 = vld [vmem:[%s308_s1 + $0x28] sm:$0xff] }
   0x2   :  { %167 = vmatpush3.msra.mxu0 %v26_v0 }
   0x3   :  { %168 = vmatprep.subr.mxu0 %v238_v1 }
   0x4   :  { %11 = vsyncpa [#allocation5], 0  ;;  %169 = vmatpush3.msra.mxu0 %v25_v2  ;;  %v23_v4 = vld [vmem:[%s308_s1 + $0x20] sm:$0xff]  ;;  %v22_v5 = vld [vmem:[%s308_s1 + $0x18] sm:$0xff]  ;;  %vm34_vm1 = vcmask 523264   ;;  %vm108_vm2 = vcmask 74752  }
   0x5   :  { %170 = vmatprep.subr.mxu0 %v238_v1  ;;  %v21_v6 = vld [vmem:[%s308_s1 + $0x10] sm:$0xff]  ;;  %v20_v7 = vld [vmem:[%s308_s1 + $0x8] sm:$0xff]  ;;  %v19_v8 = vld [vmem:[%s308_s1] sm:$0xff]  ;;  %s240_s9 = smov 118   ;;  %vm125_vm3 = vcmask 9216  }
   0x6   :  { %171 = vmatpush3.msra.mxu0 %v24_v3  ;;  %v18_v9 = vld [vmem:[%s307_s0] sm:$0x3]  ;;  %s241_s0 = smov [#allocation4]  }
   0x7   :  { %172 = vmatprep.subr.mxu0 %v238_v1  ;;  %v155_v10 = vld [vmem:[%s309_s2] ss:$0 sm:$0xff]  ;;  %s143_s1 = sshll.u32 %s241_s0, 4  ;;  %s144_s1 = int_to_ptr.vmem [resolvable:$true] %s143_s1 }
   0x8   :  { %173 = vmatpush3.msra.mxu0 %v23_v4  ;;  %s194_s2 = scalar_lea.vmem %s144_s1, 32  ;;  %p199_p1 = scmp.lt.s32.totalorder %s144_s1, %s144_s1 }
   0x9   :  { %174 = vmatprep.subr.mxu0 %v238_v1  ;;  %p195_p0 = scmp.ne.s32.totalorder %s144_s1, %s194_s2  ;;  %p200_p2 = scmp.lt.s32.totalorder %s194_s2, %s194_s2 }
   0xa   :  { %175 = vmatpush3.msra.mxu0 %v22_v5 }
   0xb   :  { %176 = vmatprep.subr.mxu0 %v238_v1  ;;  %p201_p3 = por %p200_p2, %p199_p1 }
   0xc   :  { %177 = vmatpush3.msra.mxu0 %v21_v6 }
   0xd   :  { %178 = vmatprep.subr.mxu0 %v238_v1  ;;  %p202_p4 = pnand %p201_p3, %p195_p0 }
   0xe   :  { %179 = vmatpush3.msra.mxu0 %v20_v7 }
   0xf   :  { %180 = vmatprep.subr.mxu0 %v238_v1 }
  0x10   :  { %181 = vmatpush3.msra.mxu0 %v19_v8 }
  0x11   :  { %183 = vmatmul.mubr.msk.f32.vlgmr.msra.gmra.mxu0 %vm34_vm1, %v18_v9 }
  0xd1   :  { %v104_v11 = vpop.f32.mrf.mxu0 }
  0xd2   :  { %v105_v12 = vadd.f32 %v155_v10, %v104_v11 }
  0xd3   :  { %v184_v13 = vpop.f32.mrf.mxu0 }
  0xd4   :  { %122 = vrot.lane.b32.xlu1 %v105_v12, %s240_s9  ;;  %v109_v14 = vsel %vm108_vm2, %v105_v12, -inf }
  0xd5   :  { %110 = vmax.xlane.f32.xlu0 %v109_v14 }
 0x146   :  { %v123_v15 = vpop.permute.xlu1 %122 }
 0x147   :  { %126 = vst.msk [vmem:[#allocation4] sm:$0x3] %vm125_vm3, %v123_v15 }
 0x15e   :  { %v111_v16 = vpop.xlane.xlu0 %110 }
 0x15f   :  { %v112_v17 = vsub.f32 %v105_v12, %v111_v16 }
 0x161   :  { %v113_v18 = vmul.f32 1.442695, %v112_v17 }
 0x163   :  { %190 = vpow2.f32 %v113_v18 }
 0x170   :  { %v191_v19 = vpop.eup %190 }
 0x171   :  { %v115_v20 = vsel %vm108_vm2, %v191_v19, 0.0 }
 0x172   :  { %116 = vadd.xlane.f32.xlu0 %v115_v20 }
 0x173   :  { %205 = shalt.err (!%p202_p4)
}
 0x174   :  { %146 = dma.vmem_to_hbm [thread:$0]  %s144_s1, 32, %s311_s4, [#allocation5]  }
 0x175   :  { %s242_s12 = smov [#allocation2]  }
 0x176   :  { %s133_s13 = sshll.u32 %s242_s12, 4  ;;  %s134_s13 = int_to_ptr.vmem [resolvable:$true] %s133_s13 }
 0x177   :  { %s214_s14 = scalar_lea.vmem %s134_s13, 32  ;;  %p219_p6 = scmp.lt.s32.totalorder %s134_s13, %s134_s13 }
 0x178   :  { %p215_p5 = scmp.ne.s32.totalorder %s134_s13, %s214_s14  ;;  %p220_p7 = scmp.lt.s32.totalorder %s214_s14, %s214_s14 }
 0x17a   :  { %p221_p8 = por %p220_p7, %p219_p6 }
 0x17c   :  { %p222_p9 = pnand %p221_p8, %p215_p5 }
 0x1fb   :  { %v117_v21 = vpop.xlane.xlu0 %116 }
 0x1fc   :  { %192 = vrcp.f32 %v117_v21 }
 0x209   :  { %v193_v22 = vpop.eup %192 }
 0x20a   :  { %v119_v23 = vmul.f32 %v193_v22, %v191_v19 }
 0x20c   :  { %120 = vst.msk [vmem:[#allocation2] sm:$0x3] %vm108_vm2, %v119_v23 }
 0x20d   :  { %225 = shalt.err (!%p222_p9)
}
 0x20e   :  { %136 = dma.vmem_to_hbm [thread:$0]  %s134_s13, 32, %s310_s3, [#allocation3]  }
 0x20f   :  { %234 = dma.done.wait [#allocation3], 32  }
 0x210   :  { %235 = vsyncadd [#allocation3], 4294967264 }
 0x211   :  { %236 = dma.done.wait [#allocation5], 32  }
 0x212   :  { %237 = vsyncadd [#allocation5], 4294967264 }
 0x213   :  { %153 = vsyncpa [#allocation3], 1 }
 0x214   :  { %154 = vsyncpa [#allocation5], 1 }

</bundles_post_ra>
